<compile_context>
chip_gen: v7x
topology: tpu7x:2x2x1
jax: 0.10.0
libtpu: 0.0.40
codegen_flags: <defaults>
</compile_context>

<pallas_src>
import functools

import jax
import jax.numpy as jnp
from jax import lax
from jax.experimental import pallas as pl
from jax.experimental.pallas import tpu as pltpu


def _distill_kl_kernel(ys_ref, yt_ref, out_ref, *, inv_T: float,
                       n_valid: int, tile_n: int):
    """One (tile_n, C) batch tile -> one lane-dense (1, 8, 128) partial sum."""
    # All in-kernel math in f32 regardless of input dtype.
    ys = ys_ref[...].astype(jnp.float32) * inv_T
    yt = yt_ref[...].astype(jnp.float32) * inv_T

    # Numerically stable log_softmax of student logits along the class axis.
    ys_shift = ys - jnp.max(ys, axis=-1, keepdims=True)
    log_p_s = ys_shift - jnp.log(
        jnp.sum(jnp.exp(ys_shift), axis=-1, keepdims=True))

    # Teacher side with log_sum_t folded out of the per-element term:
    #   row_kl = sum_c p_t * (log p_t - log p_s)
    #          = (sum_c exp_t * (yt_shift - log_p_s)) / sum_t - log_sum_t
    # p_t / log_p_t are never materialized as full tiles.
    yt_shift = yt - jnp.max(yt, axis=-1, keepdims=True)
    exp_t = jnp.exp(yt_shift)
    sum_t = jnp.sum(exp_t, axis=-1, keepdims=True)
    cross = jnp.sum(exp_t * (yt_shift - log_p_s), axis=-1, keepdims=True)
    # Divide is a single [tile_n, 1] multiply in the folded form; exact
    # reciprocal keeps f32-exact semantics at negligible cost.
    row_kl = cross * pl.reciprocal(sum_t, approx=False) - jnp.log(sum_t)

    # Mask rows past the true batch size.  Emitted (statically) only when the
    # last block is partial: those buffer rows hold undefined data and must
    # contribute exactly zero.  One [tile_n, 1] compare + select on the VPU.
    if n_valid % tile_n != 0:
        row_ids = lax.broadcasted_iota(jnp.int32, row_kl.shape, 0)
        row_ids = row_ids + pl.program_id(0) * tile_n
        row_kl = jnp.where(row_ids < n_valid, row_kl, 0.0)

    # Per-block partial KL sum, broadcast lane-dense into the whole (1, 8, 128)
    # output block (unmasked stores); wrapper reads [:, 0, 0].
    out_ref[...] = jnp.full(out_ref.shape, jnp.sum(row_kl), dtype=out_ref.dtype)


def _vmem_limit_bytes() -> int:
    # Half of physical VMEM, capped at 64 MiB: 64 MiB on v5e/v6e (128 MiB
    # physical), 32 MiB on v7x (64 MiB per TensorCore).  Falls back to the
    # universally safe 32 MiB if the hardware query is unavailable.
    try:
        cap = int(pltpu.get_tpu_info().vmem_capacity_bytes)
    except Exception:
        cap = 64 * 1024 * 1024
    return min(cap // 2, 64 * 1024 * 1024)


def _choose_tile_n(n: int, c: int, in_itemsize: int, vmem_limit: int) -> int:
    # Working set per grid step:
    #   2 inputs x 2 pipeline buffers x (tile_n * C * in_itemsize)
    # + ~5 full-tile f32 temporaries (upcasts, exp_t, product, log_p_s).
    # Keep it at <= 75% of the vmem limit and cap a single input tile at
    # ~2M elements (8 MiB f32 / 4 MiB bf16) -- big enough to amortize the
    # ~0.35 us per-grid-step overhead.
    bytes_per_elem = 4 * in_itemsize + 5 * 4
    max_tile_elems = min((vmem_limit * 3 // 4) // bytes_per_elem, 2 * 1024 * 1024)
    tile = max(8, (max_tile_elems // max(c, 1)) // 8 * 8)

    n_rows = ((n + 7) // 8) * 8
    # Keep >= 2 batch blocks whenever the problem allows it, so both v7x
    # TensorCores get work under dimension_semantics=("parallel",).
    if n_rows >= 16:
        half = (((n_rows + 1) // 2) + 7) // 8 * 8
        tile = min(tile, half)
    return min(tile, n_rows)


def distill_kl(y_s: jax.Array, y_t: jax.Array, T: float, *,
               tile_n: int | None = None,
               cast_inputs_to_bf16: bool = False) -> jax.Array:
    """Pallas TPU implementation of DistillKL.forward.  y_s, y_t: [N, C] logits."""
    assert y_s.shape == y_t.shape and y_s.ndim == 2
    n, c = y_s.shape

    if cast_inputs_to_bf16:
        # Halves HBM traffic on this bandwidth-bound kernel; in-kernel math
        # stays f32.  Off by default to preserve exact f32 semantics.
        y_s = y_s.astype(jnp.bfloat16)
        y_t = y_t.astype(jnp.bfloat16)

    vmem_limit = _vmem_limit_bytes()
    if tile_n is None:
        tile_n = _choose_tile_n(n, c, y_s.dtype.itemsize, vmem_limit)
    tile_n = max(8, (tile_n // 8) * 8)

    # cdiv grid -- NO padded copies of the inputs; the last (possibly partial)
    # block is masked inside the kernel.
    num_blocks = (n + tile_n - 1) // tile_n

    cost = pl.CostEstimate(
        flops=8 * n * c,
        transcendentals=2 * n * c,
        bytes_accessed=n * c * (y_s.dtype.itemsize + y_t.dtype.itemsize)
        + num_blocks * 8 * 128 * 4,
    )

    partials = pl.pallas_call(
        functools.partial(_distill_kl_kernel, inv_T=1.0 / float(T),
                          n_valid=n, tile_n=tile_n),
        out_shape=jax.ShapeDtypeStruct((num_blocks, 8, 128), jnp.float32),
        grid=(num_blocks,),
        in_specs=[
            pl.BlockSpec((tile_n, c), lambda i: (i, 0)),
            pl.BlockSpec((tile_n, c), lambda i: (i, 0)),
        ],
        out_specs=pl.BlockSpec((1, 8, 128), lambda i: (i, 0, 0)),
        compiler_params=pltpu.CompilerParams(
            dimension_semantics=("parallel",),
            vmem_limit_bytes=vmem_limit,
        ),
        cost_estimate=cost,
    )(y_s, y_t)

    # Tiny final reduction over per-block partials + T^2 / N scaling.
    return jnp.sum(partials[:, 0, 0]) * (float(T) * float(T)) / float(n)

# TODO(synk): for very large class counts (C >~ 32K) add a class-axis grid
# dimension (last, "arbitrary") with online running-max/running-sum softmax
# accumulators so a single (tile_n, C) f32 tile never has to fit v7x VMEM.


def _distill_kl_ref(y_s, y_t, T):
    # Pure-JAX reference for sanity checking (mirrors the PyTorch module).
    y_s = y_s.astype(jnp.float32)
    y_t = y_t.astype(jnp.float32)
    log_p_s = jax.nn.log_softmax(y_s / T, axis=1)
    p_t = jax.nn.softmax(y_t / T, axis=1)
    log_p_t = jax.nn.log_softmax(y_t / T, axis=1)
    return jnp.sum(p_t * (log_p_t - log_p_s)) * (T ** 2) / y_s.shape[0]


if __name__ == "__main__":
    T = 4.0
    k1, k2, k3, k4, k5, k6 = jax.random.split(jax.random.PRNGKey(0), 6)

    # Case 1: small demo shape (single block, divisible batch -> no masking).
    y_s = jax.random.normal(k1, (8, 32), dtype=jnp.float32) * 3.0
    y_t = jax.random.normal(k2, (8, 32), dtype=jnp.float32) * 3.0
    loss = distill_kl(y_s, y_t, T)
    jax.block_until_ready(loss)
    ref = _distill_kl_ref(y_s, y_t, T)
    assert jnp.allclose(loss, ref, rtol=1e-4, atol=1e-5), (loss, ref)

    # Case 2: non-multiple batch with a forced small tile -> exercises the
    # cdiv grid, the in-kernel row mask, and the per-block partial reduction.
    y_s2 = jax.random.normal(k3, (20, 100), dtype=jnp.float32) * 2.0
    y_t2 = jax.random.normal(k4, (20, 100), dtype=jnp.float32) * 2.0
    loss2 = distill_kl(y_s2, y_t2, T, tile_n=8)
    jax.block_until_ready(loss2)
    ref2 = _distill_kl_ref(y_s2, y_t2, T)
    assert jnp.allclose(loss2, ref2, rtol=1e-4, atol=1e-5), (loss2, ref2)

    # Case 3: bf16-input path (halved HBM traffic).  Compare against the f32
    # reference evaluated on the same bf16-quantized logits so only the
    # kernel's (f32) internal math is being validated.
    y_s3 = jax.random.normal(k5, (64, 256), dtype=jnp.float32) * 2.0
    y_t3 = jax.random.normal(k6, (64, 256), dtype=jnp.float32) * 2.0
    loss3 = distill_kl(y_s3, y_t3, T, cast_inputs_to_bf16=True)
    jax.block_until_ready(loss3)
    ref3 = _distill_kl_ref(y_s3.astype(jnp.bfloat16),
                           y_t3.astype(jnp.bfloat16), T)
    assert jnp.allclose(loss3, ref3, rtol=1e-4, atol=1e-4), (loss3, ref3)

    print("KERNEL_OK")
</pallas_src>

<mosaic_0001>
module attributes {stable_mosaic.version = 11 : i64} {
  func.func @_distill_kl_kernel(%arg0: i32, %arg1: memref<8x32xf32, #tpu.memory_space<vmem>>, %arg2: memref<8x32xf32, #tpu.memory_space<vmem>>, %arg3: memref<1x8x128xf32, #tpu.memory_space<vmem>>) attributes {dimension_semantics = [#tpu.dimension_semantics<parallel>], iteration_bounds = array<i64: 1>, scalar_prefetch = 0 : i64, scratch_operands = 0 : i64, tpu.core_type = #tpu.core_type<tc>, window_params = [{transform_indices = @transform_0, window_bounds = array<i64: 8, 32>}, {transform_indices = @transform_1, window_bounds = array<i64: 8, 32>}, {transform_indices = @transform_2, window_bounds = array<i64: 1, 8, 128>}]} {
    %c0 = arith.constant 0 : index
    %c0_0 = arith.constant 0 : index
    %0 = vector.load %arg1[%c0, %c0_0] : memref<8x32xf32, #tpu.memory_space<vmem>>, vector<8x32xf32>
    %cst = arith.constant 2.500000e-01 : f32
    %1 = vector.broadcast %cst : f32 to vector<8x32xf32>
    %2 = arith.mulf %0, %1 : vector<8x32xf32>
    %c0_1 = arith.constant 0 : index
    %c0_2 = arith.constant 0 : index
    %3 = vector.load %arg2[%c0_1, %c0_2] : memref<8x32xf32, #tpu.memory_space<vmem>>, vector<8x32xf32>
    %cst_3 = arith.constant 2.500000e-01 : f32
    %4 = vector.broadcast %cst_3 : f32 to vector<8x32xf32>
    %5 = arith.mulf %3, %4 : vector<8x32xf32>
    %cst_4 = arith.constant dense<0xFF800000> : vector<8xf32>
    %6 = vector.multi_reduction <maximumf>, %2, %cst_4 [1] : vector<8x32xf32> to vector<8xf32>
    %7 = vector.shape_cast %6 : vector<8xf32> to vector<8x1xf32>
    %8 = vector.broadcast %7 : vector<8x1xf32> to vector<8x32xf32>
    %9 = arith.subf %2, %8 : vector<8x32xf32>
    %10 = math.exp %9 : vector<8x32xf32>
    %cst_5 = arith.constant dense<0.000000e+00> : vector<8xf32>
    %11 = vector.multi_reduction <add>, %10, %cst_5 [1] : vector<8x32xf32> to vector<8xf32>
    %12 = vector.shape_cast %11 : vector<8xf32> to vector<8x1xf32>
    %13 = math.log %12 : vector<8x1xf32>
    %14 = vector.broadcast %13 : vector<8x1xf32> to vector<8x32xf32>
    %15 = arith.subf %9, %14 : vector<8x32xf32>
    %cst_6 = arith.constant dense<0xFF800000> : vector<8xf32>
    %16 = vector.multi_reduction <maximumf>, %5, %cst_6 [1] : vector<8x32xf32> to vector<8xf32>
    %17 = vector.shape_cast %16 : vector<8xf32> to vector<8x1xf32>
    %18 = vector.broadcast %17 : vector<8x1xf32> to vector<8x32xf32>
    %19 = arith.subf %5, %18 : vector<8x32xf32>
    %20 = math.exp %19 : vector<8x32xf32>
    %cst_7 = arith.constant dense<0.000000e+00> : vector<8xf32>
    %21 = vector.multi_reduction <add>, %20, %cst_7 [1] : vector<8x32xf32> to vector<8xf32>
    %22 = vector.shape_cast %21 : vector<8xf32> to vector<8x1xf32>
    %23 = arith.subf %19, %15 : vector<8x32xf32>
    %24 = arith.mulf %20, %23 : vector<8x32xf32>
    %cst_8 = arith.constant dense<0.000000e+00> : vector<8xf32>
    %25 = vector.multi_reduction <add>, %24, %cst_8 [1] : vector<8x32xf32> to vector<8xf32>
    %26 = vector.shape_cast %25 : vector<8xf32> to vector<8x1xf32>
    %27 = tpu.reciprocal %22 : vector<8x1xf32> -> vector<8x1xf32>
    %28 = arith.mulf %26, %27 : vector<8x1xf32>
    %29 = math.log %22 : vector<8x1xf32>
    %30 = arith.subf %28, %29 : vector<8x1xf32>
    %31 = vector.shape_cast %30 : vector<8x1xf32> to vector<1x8x1xf32>
    %cst_9 = arith.constant dense<0.000000e+00> : vector<1xf32>
    %32 = vector.multi_reduction <add>, %31, %cst_9 [1, 2] : vector<1x8x1xf32> to vector<1xf32>
    %33 = vector.shape_cast %32 : vector<1xf32> to vector<1x1x1xf32>
    %34 = vector.extract %33[0, 0, 0] : f32 from vector<1x1x1xf32>
    %35 = vector.broadcast %34 : f32 to vector<1x8x128xf32>
    %c0_10 = arith.constant 0 : index
    %c0_11 = arith.constant 0 : index
    %c0_12 = arith.constant 0 : index
    %36 = vector.load %arg3[%c0_10, %c0_11, %c0_12] : memref<1x8x128xf32, #tpu.memory_space<vmem>>, vector<1x8x128xf32>
    tpu.vector_store %arg3[%c0_10, %c0_11, %c0_12], %35 {strides = array<i32>} : memref<1x8x128xf32, #tpu.memory_space<vmem>>, vector<1x8x128xf32>,
    return
  }
  func.func @transform_0(%arg0: i32) -> (i32, i32) {
    %c0_i32 = arith.constant 0 : i32
    %c0_i32_0 = arith.constant 0 : i32
    return %arg0, %c0_i32 : i32, i32
  }
  func.func @transform_1(%arg0: i32) -> (i32, i32) {
    %c0_i32 = arith.constant 0 : i32
    %c0_i32_0 = arith.constant 0 : i32
    return %arg0, %c0_i32 : i32, i32
  }
  func.func @transform_2(%arg0: i32) -> (i32, i32, i32) {
    %c0_i32 = arith.constant 0 : i32
    %c0_i32_0 = arith.constant 0 : i32
    %c0_i32_1 = arith.constant 0 : i32
    return %arg0, %c0_i32, %c0_i32_0 : i32, i32, i32
  }
}

</mosaic_0001>

<bundles_post_ra>
// kernel: tpu_custom_call.1
= control target key start
LH: loop header
LB: loop body
LE: loop exit
PB: predicated region body
PF: predicated region fallthrough
CT: control target
= control target key end

     0   :  { %7 = vsyncpa [#allocation3], 0  ;;  %s247_s0 = inlined_call_operand.hbm [shape: f32[8,32], index: 0, kind: input, shape index: {}]   ;;  %s248_s1 = inlined_call_operand.hbm [shape: f32[8,32], index: 1, kind: input, shape index: {}]   ;;  %s249_s2 = inlined_call_operand.hbm [shape: f32[1,8,128], index: 2, kind: output, shape index: {}]  }
   0x1   :  { %8 = vsyncpa [#allocation6], 0 }
   0x2   :  { %9 = vsyncpa [#allocation4], 0  ;;  %s188_s9 = smov [#allocation2]   ;;  %s189_s11 = smov [#allocation5]  }
   0x3   :  { %s16_s10 = sshll.u32 %s188_s9, 4  ;;  %s26_s12 = sshll.u32 %s189_s11, 4  ;;  %s17_s10 = int_to_ptr.vmem [resolvable:$true] %s16_s10  ;;  %s27_s12 = int_to_ptr.vmem [resolvable:$true] %s26_s12 }
   0x4   :  { %s116_s15 = scalar_lea.hbm %s247_s0, 128 }
   0x5   :  { %p117_p0 = scmp.ne.s32.totalorder %s247_s0, %s116_s15  ;;  %p120_p1 = scmp.lt.u32.totalorder %s116_s15, %s247_s0 }
   0x7   :  { %p122_p2 = pnand %p120_p1, %p117_p0 }
   0x9   :  { %125 = shalt.err (!%p122_p2)
}
   0xa   :  { %s126_s20 = scalar_lea.vmem %s17_s10, 128  ;;  %p131_p4 = scmp.lt.s32.totalorder %s17_s10, %s17_s10 }
   0xb   :  { %p127_p3 = scmp.ne.s32.totalorder %s17_s10, %s126_s20  ;;  %p132_p5 = scmp.lt.s32.totalorder %s126_s20, %s126_s20 }
   0xd   :  { %p133_p6 = por %p132_p5, %p131_p4 }
   0xf   :  { %p134_p7 = pnand %p133_p6, %p127_p3 }
  0x11   :  { %137 = shalt.err (!%p134_p7)
}
  0x12   :  { %19 = dma.hbm_to_vmem [thread:$0]  %s247_s0, 128, %s17_s10, [#allocation3]  }
  0x13   :  { %s138_s25 = scalar_lea.hbm %s248_s1, 128 }
  0x14   :  { %p139_p8 = scmp.ne.s32.totalorder %s248_s1, %s138_s25  ;;  %p142_p9 = scmp.lt.u32.totalorder %s138_s25, %s248_s1 }
  0x16   :  { %p144_p10 = pnand %p142_p9, %p139_p8 }
  0x18   :  { %147 = shalt.err (!%p144_p10)
}
  0x19   :  { %s148_s30 = scalar_lea.vmem %s27_s12, 128  ;;  %p153_p12 = scmp.lt.s32.totalorder %s27_s12, %s27_s12 }
  0x1a   :  { %p149_p11 = scmp.ne.s32.totalorder %s27_s12, %s148_s30  ;;  %p154_p13 = scmp.lt.s32.totalorder %s148_s30, %s148_s30 }
  0x1c   :  { %p155_p0 = por %p154_p13, %p153_p12 }
  0x1e   :  { %p156_p1 = pnand %p155_p0, %p149_p11 }
  0x20   :  { %159 = shalt.err (!%p156_p1)
}
  0x21   :  { %29 = dma.hbm_to_vmem [thread:$0]  %s248_s1, 128, %s27_s12, [#allocation6]  }
  0x22   :  { %182 = dma.done.wait [#allocation3], 128  }
  0x23   :  { %183 = vsyncadd [#allocation3], 4294967168 }
  0x24   :  { %184 = dma.done.wait [#allocation6], 128  }
  0x25   :  { %185 = vsyncadd [#allocation6], 4294967168  ;;  %v36_v0 = vld [vmem:[#allocation2] sm:$0xff]  ;;  %vm40_vm0 = vcmask 261120   ;;  %v38_v3 = vld [vmem:[#allocation5] sm:$0xff]  ;;  %vm72_vm1 = vcmask 7168  }
  0x26   :  { %v37_v1 = vmul.f32 0.25, %v36_v0  ;;  %v39_v4 = vmul.f32 0.25, %v38_v3  ;;  %s190_s1 = smov [#allocation7]  }
  0x27   :  { %s91_s4 = sshll.u32 %s190_s1, 4  ;;  %s92_s4 = int_to_ptr.vmem [resolvable:$true] %s91_s4 }
  0x28   :  { %v41_v2 = vsel %vm40_vm0, %v37_v1, -inf  ;;  %v53_v5 = vsel %vm40_vm0, %v39_v4, -inf  ;;  %s160_s6 = scalar_lea.vmem %s92_s4, 128  ;;  %p165_p3 = scmp.lt.s32.totalorder %s92_s4, %s92_s4 }
  0x29   :  { %42 = vmax.xlane.f32.xlu0 %v41_v2  ;;  %p161_p2 = scmp.ne.s32.totalorder %s92_s4, %s160_s6  ;;  %p166_p4 = scmp.lt.s32.totalorder %s160_s6, %s160_s6 }
  0x2b   :  { %p167_p5 = por %p166_p4, %p165_p3 }
  0x2d   :  { %54 = vmax.xlane.f32.xlu0 %v53_v5  ;;  %p168_p6 = pnand %p167_p5, %p161_p2 }
  0xb6   :  { %v43_v6 = vpop.xlane.xlu0 %42 }
  0xb7   :  { %v44_v7 = vsub.f32 %v37_v1, %v43_v6 }
  0xb9   :  { %v45_v8 = vmul.f32 1.442695, %v44_v7 }
  0xba   :  { %v55_v11 = vpop.xlane.xlu0 %54 }
  0xbb   :  { %106 = vpow2.f32 %v45_v8  ;;  %v56_v12 = vsub.f32 %v39_v4, %v55_v11 }
  0xbd   :  { %v57_v13 = vmul.f32 1.442695, %v56_v12 }
  0xbf   :  { %108 = vpow2.f32 %v57_v13 }
  0xc5   :  { %v107_v9 = vpop.eup %106 }
  0xc6   :  { %v47_v10 = vsel %vm40_vm0, %v107_v9, 0.0 }
  0xc7   :  { %48 = vadd.xlane.f32.xlu1 %v47_v10 }
  0xc9   :  { %v109_v14 = vpop.eup %108 }
  0xca   :  { %v59_v15 = vsel %vm40_vm0, %v109_v14, 0.0 }
  0xcb   :  { %60 = vadd.xlane.f32.xlu1 %v59_v15 }
 0x154   :  { %v49_v16 = vpop.xlane.xlu1 %48 }
 0x155   :  { %110 = vlog2.f32 %v49_v16 }
 0x158   :  { %v61_v23 = vpop.xlane.xlu1 %60 }
 0x159   :  { %112 = vlog2.f32 %v61_v23 }
 0x15a   :  { %114 = vrcp.f32 %v61_v23 }
 0x15f   :  { %v111_v17 = vpop.eup %110 }
 0x160   :  { %v51_v18 = vmul.f32 0.6931472, %v111_v17 }
 0x162   :  { %v52_v19 = vsub.f32 %v44_v7, %v51_v18 }
 0x163   :  { %v113_v24 = vpop.eup %112 }
 0x164   :  { %v62_v20 = vsub.f32 %v56_v12, %v52_v19  ;;  %v115_v25 = vpop.eup %114  ;;  %v70_v26 = vmul.f32 0.6931472, %v113_v24 }
 0x166   :  { %v63_v21 = vmul.f32 %v109_v14, %v62_v20 }
 0x168   :  { %v64_v22 = vsel %vm40_vm0, %v63_v21, 0.0 }
 0x169   :  { %65 = vadd.xlane.f32.xlu0 %v64_v22 }
 0x1f6   :  { %v66_v27 = vpop.xlane.xlu0 %65 }
 0x1f7   :  { %v68_v28 = vmul.f32 %v115_v25, %v66_v27 }
 0x1f9   :  { %v71_v29 = vsub.f32 %v68_v28, %v70_v26 }
 0x1fb   :  { %v73_v30 = vsel %vm72_vm1, %v71_v29, 0.0 }
 0x1fc   :  { %74 = vadd.xlane.f32.xlu1 %v73_v30 }
 0x289   :  { %v75_v31 = vpop.xlane.xlu1 %74 }
 0x28a   :  { %v76_v32 = vrot.slane %v75_v31, 4 }
 0x28c   :  { %v77_v33 = vadd.f32 %v76_v32, %v75_v31 }
 0x28e   :  { %v78_v34 = vrot.slane %v77_v33, 2 }
 0x290   :  { %v79_v35 = vadd.f32 %v78_v34, %v77_v33 }
 0x292   :  { %v80_v36 = vrot.slane %v79_v35, 1 }
 0x294   :  { %v81_v37 = vadd.f32 %v80_v36, %v79_v35 }
 0x296   :  { %101 = vpush %v81_v37 }
 0x2c7   :  { %s102_s5 = spop %101 }
 0x2c8   :  { %v83_v38 = vstv %s102_s5 }
 0x2c9   :  { %84 = vst [vmem:[#allocation7] sm:$0xff] %v83_v38 }
 0x2ca   :  { %171 = shalt.err (!%p168_p6)
}
 0x2cb   :  { %s172_s9 = scalar_lea.hbm %s249_s2, 128 }
 0x2cc   :  { %p173_p7 = scmp.ne.s32.totalorder %s249_s2, %s172_s9  ;;  %p176_p8 = scmp.lt.u32.totalorder %s172_s9, %s249_s2 }
 0x2ce   :  { %p178_p9 = pnand %p176_p8, %p173_p7 }
 0x2d0   :  { %181 = shalt.err (!%p178_p9)
}
 0x2d1   :  { %94 = dma.vmem_to_hbm [thread:$0]  %s92_s4, 128, %s249_s2, [#allocation4]  }
 0x2d2   :  { %186 = dma.done.wait [#allocation4], 128  }
 0x2d3   :  { %187 = vsyncadd [#allocation4], 4294967168 }
 0x2d4   :  { %98 = vsyncpa [#allocation3], 1 }
 0x2d5   :  { %99 = vsyncpa [#allocation6], 1 }
 0x2d6   :  { %100 = vsyncpa [#allocation4], 1 }

</bundles_post_ra>
